<compile_context>
chip_gen: v5e
topology: v5e:2x2
jax: 0.10.0
libtpu: 0.0.40
codegen_flags: <defaults>
</compile_context>

<pallas_src>
import functools

import jax
import jax.numpy as jnp
from jax import lax
from jax.experimental import pallas as pl
from jax.experimental.pallas import tpu as pltpu

_NEG = -1e30  # finite "minus infinity" (avoids inf-inf / inf*0 NaNs)


def _round_up(x, m):
    return (x + m - 1) // m * m


def _supcon_kernel(row_ids_ref, col_ids_ref, pos_cnt_ref, qa_ref, kc_ref,
                   out_ref, m_sc, l_sc, s_sc, *,
                   inv_temp, loss_scale, n_anchor, n_contrast, has_pad):
    tm = qa_ref.shape[0]
    tn = kc_ref.shape[1]          # multiple of 128 by construction
    lane_reps = tn // 128
    j = pl.program_id(1)
    last_j = pl.num_programs(1) - 1
    row_start = pl.program_id(0) * tm
    col_start = j * tn

    @pl.when(j == 0)
    def _init():
        m_sc[...] = jnp.full_like(m_sc, _NEG)
        l_sc[...] = jnp.zeros_like(l_sc)
        s_sc[...] = jnp.zeros_like(s_sc)

    # NN-form MXU matmul (contrast features pre-transposed in the wrapper);
    # 1/temperature is folded into the f32 result, not the (possibly bf16) operands.
    adc = jnp.dot(qa_ref[...], kc_ref[...],
                  preferred_element_type=jnp.float32) * inv_temp        # [tm, tn]
    # Positive mask from the label vectors: [tm,1] == [1,tn] broadcast compare.
    pos = row_ids_ref[...] == col_ids_ref[...]                          # [tm, tn]

    def _online_update(apply_mask):
        if apply_mask:
            row_gid = row_start + lax.broadcasted_iota(jnp.int32, (tm, 1), 0)
            col_gid = col_start + lax.broadcasted_iota(jnp.int32, (1, tn), 1)
            not_self = row_gid != col_gid                                # [tm, tn]
            if has_pad:
                col_valid = col_gid < n_contrast                         # [1, tn]
                lse_mask = jnp.logical_and(col_valid, not_self)
                # The reference takes the row max over *all* real columns
                # (including self), so only padded columns are dropped here.
                max_src = jnp.where(col_valid, adc, _NEG)
            else:
                lse_mask = not_self
                max_src = adc
            adc_lse = jnp.where(lse_mask, adc, _NEG)
            pos_t = jnp.logical_and(pos, lse_mask)
        else:
            # Interior tile: no self-contrast column, no padded columns.
            max_src = adc
            adc_lse = adc
            pos_t = pos

        m_prev = m_sc[...]                                               # [tm, 128]
        tile_max = jnp.max(max_src, axis=1, keepdims=True)               # [tm, 1]
        m_next = jnp.maximum(m_prev, tile_max)                           # [tm, 128]
        exp_t = jnp.exp(adc_lse - jnp.tile(m_next, (1, lane_reps)))      # [tm, tn]
        alpha = jnp.exp(m_prev - m_next)                                 # [tm, 128]
        l_sc[...] = alpha * l_sc[...] + jnp.sum(exp_t, axis=1, keepdims=True)
        s_sc[...] = s_sc[...] + jnp.sum(jnp.where(pos_t, adc, 0.0),
                                        axis=1, keepdims=True)
        m_sc[...] = m_next

    # Masks are only needed on tiles that overlap the diagonal (self-contrast) or
    # that (statically) contain padded columns; everything else is mask-free.
    diag = jnp.logical_and(row_start < col_start + tn,
                           col_start < row_start + tm)
    needs_mask = jnp.logical_or(diag, j == last_j) if has_pad else diag

    @pl.when(needs_mask)
    def _masked():
        _online_update(True)

    @pl.when(jnp.logical_not(needs_mask))
    def _plain():
        _online_update(False)

    @pl.when(j == last_j)
    def _finalize():
        m = m_sc[...][:, :1]
        l = l_sc[...][:, :1]
        s = s_sc[...][:, :1]
        # mean log prob over positives = s/p - m - log(l).  p == 0 -> 0/0 -> NaN,
        # exactly like the PyTorch reference (anchors with no positives).
        mlpp = s / pos_cnt_ref[...] - m - jnp.log(l)
        row_valid = (row_start +
                     lax.broadcasted_iota(jnp.int32, (tm, 1), 0)) < n_anchor
        out_ref[...] = jnp.where(row_valid, -loss_scale * mlpp, 0.0)


def _pick_tiles(n_anchor, n_contrast, dim, comp_bytes, block_rows, block_cols):
    """Choose (tm, tn) from a VMEM budget, not from MXU dimensions."""
    sub = 16 if comp_bytes == 2 else 8

    def est(tm_, tn_):
        return (2 * tm_ * dim * comp_bytes          # anchor tile (double-buffered)
                + 2 * dim * tn_ * comp_bytes        # contrast tile (double-buffered)
                + 3 * tm_ * 128 * 4                 # m/l/s scratch
                + 4 * tm_ * tn_ * 4                 # [tm,tn] f32 temporaries
                + 4 * (3 * tm_ + tn_))              # ids / counts / output
    budget = 24 * 1024 * 1024

    tm_full = _round_up(n_anchor, sub)
    cap = min(_round_up(block_rows, sub) if block_rows else 256, tm_full)
    if block_rows is not None:
        tm = cap
    else:
        # >=2 row tiles whenever possible so both v7x TensorCores get work.
        n_tiles = max(2 if n_anchor > sub else 1, -(-n_anchor // cap))
        tm = min(cap, _round_up(-(-n_anchor // n_tiles), sub))

    tn_cap = _round_up(block_cols, 128) if block_cols else 2048
    tn = max(128, min(tn_cap, _round_up(n_contrast, 128)))
    while tn > 128 and est(tm, tn) > budget:
        tn -= 128
    while tm > sub and est(tm, tn) > budget:
        tm = max(sub, _round_up(tm // 2, sub))

    m_pad = _round_up(n_anchor, tm)
    n_pad = _round_up(n_contrast, tn)
    return tm, m_pad, tn, n_pad, est(tm, tn)


def supcon_loss(features, labels=None, mask=None, *, temperature=0.07,
                contrast_mode='all', base_temperature=0.07,
                block_rows=None, block_cols=None, use_bf16_matmul=True):
    """Pallas TPU implementation of SupConLoss.forward (loss path)."""
    features = jnp.asarray(features)
    if features.ndim < 3:
        raise ValueError('`features` needs to be [bsz, n_views, ...]')
    if features.ndim > 3:
        features = features.reshape(features.shape[0], features.shape[1], -1)
    bsz, n_views, dim = features.shape

    if labels is not None and mask is not None:
        raise ValueError('Cannot define both `labels` and `mask`')
    if mask is not None:
        # TODO(synk): arbitrary [bsz,bsz] masks are not kernelized.
        raise NotImplementedError('explicit `mask` is not supported by the kernel')
    if labels is None:
        sample_ids = jnp.arange(bsz, dtype=jnp.int32)        # eye(bsz) positives
    else:
        labels = jnp.asarray(labels).reshape(-1)
        if labels.shape[0] != bsz:
            raise ValueError('Num of labels does not match num of features')
        sample_ids = labels.astype(jnp.int32)

    n_contrast = n_views * bsz
    if contrast_mode == 'one':
        n_anchor = bsz
    elif contrast_mode == 'all':
        n_anchor = n_contrast
    else:
        raise ValueError(f'Unknown mode: {contrast_mode}')

    comp_dtype = jnp.bfloat16 if use_bf16_matmul else jnp.float32
    comp_bytes = 2 if use_bf16_matmul else 4

    # torch.cat(torch.unbind(features, 1), 0): view-major row ordering.
    contrast = jnp.transpose(features, (1, 0, 2)).reshape(n_contrast, dim)
    contrast = contrast.astype(comp_dtype)                    # cast once, in wrapper
    contrast_ids = jnp.tile(sample_ids, (n_views,))
    anchor = contrast[:n_anchor]
    anchor_ids = contrast_ids[:n_anchor]

    # Per-anchor positive count (self-contrast excluded), computed once here.
    same = sample_ids[:, None] == sample_ids[None, :]
    p_sample = jnp.sum(same, axis=1).astype(jnp.int32) * n_views - 1
    pos_cnt = jnp.tile(p_sample, (n_views,))[:n_anchor].astype(jnp.float32)

    tm, m_pad, tn, n_pad, vmem_est = _pick_tiles(
        n_anchor, n_contrast, dim, comp_bytes, block_rows, block_cols)

    feat_a = jnp.pad(anchor, ((0, m_pad - n_anchor), (0, 0)))
    feat_ct = jnp.pad(contrast, ((0, n_pad - n_contrast), (0, 0))).T   # [dim, n_pad]
    row_ids = jnp.pad(anchor_ids, (0, m_pad - n_anchor),
                      constant_values=-1).reshape(m_pad, 1)
    col_ids = jnp.pad(contrast_ids, (0, n_pad - n_contrast),
                      constant_values=-1).reshape(1, n_pad)
    pos_cnt = jnp.pad(pos_cnt, (0, m_pad - n_anchor),
                      constant_values=1.0).reshape(m_pad, 1)

    grid = (m_pad // tm, n_pad // tn)
    kernel = functools.partial(
        _supcon_kernel,
        inv_temp=float(1.0 / temperature),
        loss_scale=float(temperature / base_temperature),
        n_anchor=n_anchor, n_contrast=n_contrast,
        has_pad=(n_pad != n_contrast))

    vmem_limit = int(max(32 * 1024 * 1024,
                         min(48 * 1024 * 1024, vmem_est + 8 * 1024 * 1024)))

    per_anchor = pl.pallas_call(
        kernel,
        out_shape=jax.ShapeDtypeStruct((m_pad, 1), jnp.float32),
        grid=grid,
        in_specs=[
            pl.BlockSpec((tm, 1), lambda i, j: (i, 0)),        # anchor ids
            pl.BlockSpec((1, tn), lambda i, j: (0, j)),        # contrast ids
            pl.BlockSpec((tm, 1), lambda i, j: (i, 0)),        # positive counts
            pl.BlockSpec((tm, dim), lambda i, j: (i, 0)),      # anchor features
            pl.BlockSpec((dim, tn), lambda i, j: (0, j)),      # contrast features^T
        ],
        out_specs=pl.BlockSpec((tm, 1), lambda i, j: (i, 0)),
        scratch_shapes=[pltpu.VMEM((tm, 128), jnp.float32)] * 3,   # m, l, s
        compiler_params=pltpu.CompilerParams(
            dimension_semantics=("parallel", "arbitrary"),
            vmem_limit_bytes=vmem_limit),
        cost_estimate=pl.CostEstimate(
            flops=2 * m_pad * n_pad * dim,
            transcendentals=m_pad * n_pad,
            bytes_accessed=int(m_pad * dim * comp_bytes
                               + grid[0] * n_pad * dim * comp_bytes   # K streamed per row sweep
                               + grid[0] * n_pad * 4 + 3 * m_pad * 4)),
    )(row_ids, col_ids, pos_cnt, feat_a, feat_ct)

    # loss.view(anchor_count, batch_size).mean() == mean over all real anchors.
    return jnp.sum(per_anchor[:n_anchor, 0]) / n_anchor


def _supcon_loss_ref(features, labels=None, *, temperature=0.07,
                     base_temperature=0.07, contrast_mode='all'):
    """Pure-JAX f32 reference mirroring the PyTorch forward."""
    bsz, n_views, dim = features.shape
    if labels is None:
        mask = jnp.eye(bsz, dtype=jnp.float32)
    else:
        labels = labels.reshape(-1, 1)
        mask = (labels == labels.T).astype(jnp.float32)
    cf = jnp.transpose(features, (1, 0, 2)).reshape(n_views * bsz, dim)
    if contrast_mode == 'one':
        af, anchor_count = features[:, 0], 1
    else:
        af, anchor_count = cf, n_views
    adc = jnp.dot(af, cf.T, precision=lax.Precision.HIGHEST) / temperature
    logits = adc - jnp.max(adc, axis=1, keepdims=True)
    mask = jnp.tile(mask, (anchor_count, n_views))
    na, nc = anchor_count * bsz, n_views * bsz
    logits_mask = (jnp.arange(na)[:, None] != jnp.arange(nc)[None, :]).astype(jnp.float32)
    mask = mask * logits_mask
    exp_logits = jnp.exp(logits) * logits_mask
    log_prob = logits - jnp.log(jnp.sum(exp_logits, axis=1, keepdims=True))
    mlpp = jnp.sum(mask * log_prob, axis=1) / jnp.sum(mask, axis=1)
    return jnp.mean(-(temperature / base_temperature) * mlpp)


if __name__ == "__main__":
    jax.config.update("jax_default_matmul_precision", "highest")
    key = jax.random.PRNGKey(0)
    kf1, kl1, kf2, kl2, kf3, kl3 = jax.random.split(key, 6)

    def check(got, want, rtol, atol, name):
        got = float(jax.block_until_ready(got))
        want = float(want)
        assert abs(got - want) <= atol + rtol * abs(want), (name, got, want)

    # Case 1: small shapes, all three modes; exact f32 path + default bf16 path.
    bsz, n_views, dim = 8, 2, 32
    f1 = jax.random.normal(kf1, (bsz, n_views, dim), dtype=jnp.float32)
    f1 = f1 / jnp.linalg.norm(f1, axis=-1, keepdims=True)
    l1 = jax.random.randint(kl1, (bsz,), 0, 4)
    check(supcon_loss(f1, use_bf16_matmul=False), _supcon_loss_ref(f1),
          1e-4, 1e-4, "simclr_f32")
    check(supcon_loss(f1, labels=l1, use_bf16_matmul=False),
          _supcon_loss_ref(f1, labels=l1), 1e-4, 1e-4, "sup_f32")
    check(supcon_loss(f1, labels=l1, contrast_mode='one', use_bf16_matmul=False),
          _supcon_loss_ref(f1, labels=l1, contrast_mode='one'),
          1e-4, 1e-4, "one_f32")
    check(supcon_loss(f1, labels=l1),                    # bf16 MXU default path
          _supcon_loss_ref(f1, labels=l1), 3e-2, 3e-2, "sup_bf16")

    # Case 2: multi-tile grid (2x3): interior mask-free tiles, diagonal tiles,
    # padded anchor rows, online LSE across several column tiles.
    bsz, n_views, dim = 192, 2, 64
    f2 = jax.random.normal(kf2, (bsz, n_views, dim), dtype=jnp.float32)
    f2 = f2 / jnp.linalg.norm(f2, axis=-1, keepdims=True)
    l2 = jax.random.randint(kl2, (bsz,), 0, 12)
    want2 = _supcon_loss_ref(f2, labels=l2)
    check(supcon_loss(f2, labels=l2, block_cols=128, use_bf16_matmul=False),
          want2, 1e-4, 1e-4, "multitile_f32")
    check(supcon_loss(f2, labels=l2, block_cols=128), want2, 3e-2, 3e-2,
          "multitile_bf16")

    # Case 3: padded contrast columns (n_contrast=192 -> n_pad=256).
    bsz, n_views, dim = 96, 2, 64
    f3 = jax.random.normal(kf3, (bsz, n_views, dim), dtype=jnp.float32)
    f3 = f3 / jnp.linalg.norm(f3, axis=-1, keepdims=True)
    l3 = jax.random.randint(kl3, (bsz,), 0, 10)
    check(supcon_loss(f3, labels=l3, use_bf16_matmul=False),
          _supcon_loss_ref(f3, labels=l3), 1e-4, 1e-4, "colpad_f32")

    print("KERNEL_OK")
</pallas_src>

<mosaic_0001>
module attributes {stable_mosaic.version = 11 : i64} {
  func.func @_supcon_kernel(%arg0: i32, %arg1: i32, %arg2: memref<8x1xi32, #tpu.memory_space<vmem>>, %arg3: memref<1x128xi32, #tpu.memory_space<vmem>>, %arg4: memref<8x1xf32, #tpu.memory_space<vmem>>, %arg5: memref<8x32xf32, #tpu.memory_space<vmem>>, %arg6: memref<32x128xf32, #tpu.memory_space<vmem>>, %arg7: memref<8x1xf32, #tpu.memory_space<vmem>>, %arg8: memref<8x128xf32, #tpu.memory_space<vmem>>, %arg9: memref<8x128xf32, #tpu.memory_space<vmem>>, %arg10: memref<8x128xf32, #tpu.memory_space<vmem>>) attributes {dimension_semantics = [#tpu.dimension_semantics<parallel>, #tpu.dimension_semantics<arbitrary>], iteration_bounds = array<i64: 2, 1>, scalar_prefetch = 0 : i64, scratch_operands = 3 : i64, tpu.core_type = #tpu.core_type<tc>, window_params = [{transform_indices = @transform_0, window_bounds = array<i64: 8, 1>}, {transform_indices = @transform_1, window_bounds = array<i64: 1, 128>}, {transform_indices = @transform_2, window_bounds = array<i64: 8, 1>}, {transform_indices = @transform_3, window_bounds = array<i64: 8, 32>}, {transform_indices = @transform_4, window_bounds = array<i64: 32, 128>}, {transform_indices = @transform_5, window_bounds = array<i64: 8, 1>}]} {
    %c8_i32 = arith.constant 8 : i32
    %0 = arith.muli %arg0, %c8_i32 : i32
    %c128_i32 = arith.constant 128 : i32
    %1 = arith.muli %arg1, %c128_i32 : i32
    %c0_i32 = arith.constant 0 : i32
    %2 = arith.cmpi eq, %arg1, %c0_i32 : i32
    %3 = arith.extui %2 : i1 to i32
    %c0_i32_0 = arith.constant 0 : i32
    %4 = arith.cmpi ne, %3, %c0_i32_0 : i32
    scf.if %4 {
      %cst_16 = arith.constant -1.000000e+30 : f32
      %30 = vector.broadcast %cst_16 : f32 to vector<8x128xf32>
      %c0_17 = arith.constant 0 : index
      %c0_18 = arith.constant 0 : index
      %31 = vector.load %arg8[%c0_17, %c0_18] : memref<8x128xf32, #tpu.memory_space<vmem>>, vector<8x128xf32>
      tpu.vector_store %arg8[%c0_17, %c0_18], %30 {strides = array<i32>} : memref<8x128xf32, #tpu.memory_space<vmem>>, vector<8x128xf32>,
      %cst_19 = arith.constant 0.000000e+00 : f32
      %32 = vector.broadcast %cst_19 : f32 to vector<8x128xf32>
      %c0_20 = arith.constant 0 : index
      %c0_21 = arith.constant 0 : index
      %33 = vector.load %arg9[%c0_20, %c0_21] : memref<8x128xf32, #tpu.memory_space<vmem>>, vector<8x128xf32>
      tpu.vector_store %arg9[%c0_20, %c0_21], %32 {strides = array<i32>} : memref<8x128xf32, #tpu.memory_space<vmem>>, vector<8x128xf32>,
      %cst_22 = arith.constant 0.000000e+00 : f32
      %34 = vector.broadcast %cst_22 : f32 to vector<8x128xf32>
      %c0_23 = arith.constant 0 : index
      %c0_24 = arith.constant 0 : index
      %35 = vector.load %arg10[%c0_23, %c0_24] : memref<8x128xf32, #tpu.memory_space<vmem>>, vector<8x128xf32>
      tpu.vector_store %arg10[%c0_23, %c0_24], %34 {strides = array<i32>} : memref<8x128xf32, #tpu.memory_space<vmem>>, vector<8x128xf32>,
    } else {
    }
    %c0 = arith.constant 0 : index
    %c0_1 = arith.constant 0 : index
    %5 = vector.load %arg5[%c0, %c0_1] : memref<8x32xf32, #tpu.memory_space<vmem>>, vector<8x32xf32>
    %c0_2 = arith.constant 0 : index
    %c0_3 = arith.constant 0 : index
    %6 = vector.load %arg6[%c0_2, %c0_3] : memref<32x128xf32, #tpu.memory_space<vmem>>, vector<32x128xf32>
    %cst = arith.constant dense<0.000000e+00> : vector<8x128xf32>
    %7 = tpu.matmul %5, %6, %cst {dimension_numbers = #tpu.dot_dimension_numbers<[1], [0], [0], [1], [0, 0, 1, 1], [], []>, precision = #tpu.contract_precision<fp32>} : vector<8x32xf32>, vector<32x128xf32>, vector<8x128xf32> -> vector<8x128xf32>
    %cst_4 = arith.constant 14.2857141 : f32
    %8 = vector.broadcast %cst_4 : f32 to vector<8x128xf32>
    %9 = arith.mulf %7, %8 : vector<8x128xf32>
    %c0_5 = arith.constant 0 : index
    %c0_6 = arith.constant 0 : index
    %10 = vector.load %arg2[%c0_5, %c0_6] : memref<8x1xi32, #tpu.memory_space<vmem>>, vector<8x1xi32>
    %c0_7 = arith.constant 0 : index
    %c0_8 = arith.constant 0 : index
    %11 = vector.load %arg3[%c0_7, %c0_8] : memref<1x128xi32, #tpu.memory_space<vmem>>, vector<1x128xi32>
    %12 = vector.broadcast %10 : vector<8x1xi32> to vector<8x128xi32>
    %13 = vector.broadcast %11 : vector<1x128xi32> to vector<8x128xi32>
    %14 = arith.cmpi eq, %12, %13 : vector<8x128xi32>
    %c128_i32_9 = arith.constant 128 : i32
    %15 = arith.addi %1, %c128_i32_9 : i32
    %16 = arith.cmpi slt, %0, %15 : i32
    %c8_i32_10 = arith.constant 8 : i32
    %17 = arith.addi %0, %c8_i32_10 : i32
    %18 = arith.cmpi slt, %1, %17 : i32
    %19 = arith.andi %16, %18 : i1
    %c0_i32_11 = arith.constant 0 : i32
    %20 = arith.cmpi eq, %arg1, %c0_i32_11 : i32
    %21 = arith.ori %19, %20 : i1
    %22 = arith.extui %21 : i1 to i32
    %c0_i32_12 = arith.constant 0 : i32
    %23 = arith.cmpi ne, %22, %c0_i32_12 : i32
    scf.if %23 {
      %30 = tpu.iota {dimensions = array<i32: 0>} : vector<8x1xi32>
      %31 = vector.broadcast %0 : i32 to vector<8x1xi32>
      %32 = arith.addi %31, %30 : vector<8x1xi32>
      %33 = tpu.iota {dimensions = array<i32: 1>} : vector<1x128xi32>
      %34 = vector.broadcast %1 : i32 to vector<1x128xi32>
      %35 = arith.addi %34, %33 : vector<1x128xi32>
      %36 = vector.broadcast %32 : vector<8x1xi32> to vector<8x128xi32>
      %37 = vector.broadcast %35 : vector<1x128xi32> to vector<8x128xi32>
      %38 = arith.cmpi ne, %36, %37 : vector<8x128xi32>
      %c16_i32 = arith.constant 16 : i32
      %39 = vector.broadcast %c16_i32 : i32 to vector<1x128xi32>
      %40 = arith.cmpi slt, %35, %39 : vector<1x128xi32>
      %41 = vector.broadcast %40 : vector<1x128xi1> to vector<8x128xi1>
      %42 = arith.andi %41, %38 : vector<8x128xi1>
      %cst_16 = arith.constant -1.000000e+30 : f32
      %43 = vector.shape_cast %40 : vector<1x128xi1> to vector<1x128xi1>
      %44 = vector.broadcast %43 : vector<1x128xi1> to vector<8x128xi1>
      %45 = vector.broadcast %cst_16 : f32 to vector<8x128xf32>
      %46 = arith.select %44, %9, %45 : vector<8x128xi1>, vector<8x128xf32>
      %cst_17 = arith.constant -1.000000e+30 : f32
      %47 = vector.broadcast %cst_17 : f32 to vector<8x128xf32>
      %48 = arith.select %42, %9, %47 : vector<8x128xi1>, vector<8x128xf32>
      %49 = arith.andi %14, %42 : vector<8x128xi1>
      %c0_18 = arith.constant 0 : index
      %c0_19 = arith.constant 0 : index
      %50 = vector.load %arg8[%c0_18, %c0_19] : memref<8x128xf32, #tpu.memory_space<vmem>>, vector<8x128xf32>
      %cst_20 = arith.constant dense<0xFF800000> : vector<8xf32>
      %51 = vector.multi_reduction <maximumf>, %46, %cst_20 [1] : vector<8x128xf32> to vector<8xf32>
      %52 = vector.shape_cast %51 : vector<8xf32> to vector<8x1xf32>
      %53 = vector.broadcast %52 : vector<8x1xf32> to vector<8x128xf32>
      %54 = arith.maximumf %50, %53 : vector<8x128xf32>
      %55 = arith.subf %48, %54 : vector<8x128xf32>
      %56 = math.exp %55 : vector<8x128xf32>
      %57 = arith.subf %50, %54 : vector<8x128xf32>
      %58 = math.exp %57 : vector<8x128xf32>
      %c0_21 = arith.constant 0 : index
      %c0_22 = arith.constant 0 : index
      %59 = vector.load %arg9[%c0_21, %c0_22] : memref<8x128xf32, #tpu.memory_space<vmem>>, vector<8x128xf32>
      %60 = arith.mulf %58, %59 : vector<8x128xf32>
      %cst_23 = arith.constant dense<0.000000e+00> : vector<8xf32>
      %61 = vector.multi_reduction <add>, %56, %cst_23 [1] : vector<8x128xf32> to vector<8xf32>
      %62 = vector.shape_cast %61 : vector<8xf32> to vector<8x1xf32>
      %63 = vector.broadcast %62 : vector<8x1xf32> to vector<8x128xf32>
      %64 = arith.addf %60, %63 : vector<8x128xf32>
      %c0_24 = arith.constant 0 : index
      %c0_25 = arith.constant 0 : index
      %65 = vector.load %arg9[%c0_24, %c0_25] : memref<8x128xf32, #tpu.memory_space<vmem>>, vector<8x128xf32>
      tpu.vector_store %arg9[%c0_24, %c0_25], %64 {strides = array<i32>} : memref<8x128xf32, #tpu.memory_space<vmem>>, vector<8x128xf32>,
      %c0_26 = arith.constant 0 : index
      %c0_27 = arith.constant 0 : index
      %66 = vector.load %arg10[%c0_26, %c0_27] : memref<8x128xf32, #tpu.memory_space<vmem>>, vector<8x128xf32>
      %cst_28 = arith.constant 0.000000e+00 : f32
      %67 = vector.broadcast %cst_28 : f32 to vector<8x128xf32>
      %68 = arith.select %49, %9, %67 : vector<8x128xi1>, vector<8x128xf32>
      %cst_29 = arith.constant dense<0.000000e+00> : vector<8xf32>
      %69 = vector.multi_reduction <add>, %68, %cst_29 [1] : vector<8x128xf32> to vector<8xf32>
      %70 = vector.shape_cast %69 : vector<8xf32> to vector<8x1xf32>
      %71 = vector.broadcast %70 : vector<8x1xf32> to vector<8x128xf32>
      %72 = arith.addf %66, %71 : vector<8x128xf32>
      %c0_30 = arith.constant 0 : index
      %c0_31 = arith.constant 0 : index
      %73 = vector.load %arg10[%c0_30, %c0_31] : memref<8x128xf32, #tpu.memory_space<vmem>>, vector<8x128xf32>
      tpu.vector_store %arg10[%c0_30, %c0_31], %72 {strides = array<i32>} : memref<8x128xf32, #tpu.memory_space<vmem>>, vector<8x128xf32>,
      %c0_32 = arith.constant 0 : index
      %c0_33 = arith.constant 0 : index
      %74 = vector.load %arg8[%c0_32, %c0_33] : memref<8x128xf32, #tpu.memory_space<vmem>>, vector<8x128xf32>
      tpu.vector_store %arg8[%c0_32, %c0_33], %54 {strides = array<i32>} : memref<8x128xf32, #tpu.memory_space<vmem>>, vector<8x128xf32>,
    } else {
    }
    %true = arith.constant true
    %24 = arith.xori %21, %true : i1
    %25 = arith.extui %24 : i1 to i32
    %c0_i32_13 = arith.constant 0 : i32
    %26 = arith.cmpi ne, %25, %c0_i32_13 : i32
    scf.if %26 {
      %c0_16 = arith.constant 0 : index
      %c0_17 = arith.constant 0 : index
      %30 = vector.load %arg8[%c0_16, %c0_17] : memref<8x128xf32, #tpu.memory_space<vmem>>, vector<8x128xf32>
      %cst_18 = arith.constant dense<0xFF800000> : vector<8xf32>
      %31 = vector.multi_reduction <maximumf>, %9, %cst_18 [1] : vector<8x128xf32> to vector<8xf32>
      %32 = vector.shape_cast %31 : vector<8xf32> to vector<8x1xf32>
      %33 = vector.broadcast %32 : vector<8x1xf32> to vector<8x128xf32>
      %34 = arith.maximumf %30, %33 : vector<8x128xf32>
      %35 = arith.subf %9, %34 : vector<8x128xf32>
      %36 = math.exp %35 : vector<8x128xf32>
      %37 = arith.subf %30, %34 : vector<8x128xf32>
      %38 = math.exp %37 : vector<8x128xf32>
      %c0_19 = arith.constant 0 : index
      %c0_20 = arith.constant 0 : index
      %39 = vector.load %arg9[%c0_19, %c0_20] : memref<8x128xf32, #tpu.memory_space<vmem>>, vector<8x128xf32>
      %40 = arith.mulf %38, %39 : vector<8x128xf32>
      %cst_21 = arith.constant dense<0.000000e+00> : vector<8xf32>
      %41 = vector.multi_reduction <add>, %36, %cst_21 [1] : vector<8x128xf32> to vector<8xf32>
      %42 = vector.shape_cast %41 : vector<8xf32> to vector<8x1xf32>
      %43 = vector.broadcast %42 : vector<8x1xf32> to vector<8x128xf32>
      %44 = arith.addf %40, %43 : vector<8x128xf32>
      %c0_22 = arith.constant 0 : index
      %c0_23 = arith.constant 0 : index
      %45 = vector.load %arg9[%c0_22, %c0_23] : memref<8x128xf32, #tpu.memory_space<vmem>>, vector<8x128xf32>
      tpu.vector_store %arg9[%c0_22, %c0_23], %44 {strides = array<i32>} : memref<8x128xf32, #tpu.memory_space<vmem>>, vector<8x128xf32>,
      %c0_24 = arith.constant 0 : index
      %c0_25 = arith.constant 0 : index
      %46 = vector.load %arg10[%c0_24, %c0_25] : memref<8x128xf32, #tpu.memory_space<vmem>>, vector<8x128xf32>
      %cst_26 = arith.constant 0.000000e+00 : f32
      %47 = vector.broadcast %cst_26 : f32 to vector<8x128xf32>
      %48 = arith.select %14, %9, %47 : vector<8x128xi1>, vector<8x128xf32>
      %cst_27 = arith.constant dense<0.000000e+00> : vector<8xf32>
      %49 = vector.multi_reduction <add>, %48, %cst_27 [1] : vector<8x128xf32> to vector<8xf32>
      %50 = vector.shape_cast %49 : vector<8xf32> to vector<8x1xf32>
      %51 = vector.broadcast %50 : vector<8x1xf32> to vector<8x128xf32>
      %52 = arith.addf %46, %51 : vector<8x128xf32>
      %c0_28 = arith.constant 0 : index
      %c0_29 = arith.constant 0 : index
      %53 = vector.load %arg10[%c0_28, %c0_29] : memref<8x128xf32, #tpu.memory_space<vmem>>, vector<8x128xf32>
      tpu.vector_store %arg10[%c0_28, %c0_29], %52 {strides = array<i32>} : memref<8x128xf32, #tpu.memory_space<vmem>>, vector<8x128xf32>,
      %c0_30 = arith.constant 0 : index
      %c0_31 = arith.constant 0 : index
      %54 = vector.load %arg8[%c0_30, %c0_31] : memref<8x128xf32, #tpu.memory_space<vmem>>, vector<8x128xf32>
      tpu.vector_store %arg8[%c0_30, %c0_31], %34 {strides = array<i32>} : memref<8x128xf32, #tpu.memory_space<vmem>>, vector<8x128xf32>,
    } else {
    }
    %c0_i32_14 = arith.constant 0 : i32
    %27 = arith.cmpi eq, %arg1, %c0_i32_14 : i32
    %28 = arith.extui %27 : i1 to i32
    %c0_i32_15 = arith.constant 0 : i32
    %29 = arith.cmpi ne, %28, %c0_i32_15 : i32
    scf.if %29 {
      %c0_16 = arith.constant 0 : index
      %c0_17 = arith.constant 0 : index
      %30 = vector.load %arg8[%c0_16, %c0_17] : memref<8x128xf32, #tpu.memory_space<vmem>>, vector<8x128xf32>
      %31 = vector.extract_strided_slice %30 {offsets = [0, 0], sizes = [8, 1], strides = [1, 1]} : vector<8x128xf32> to vector<8x1xf32>
      %c0_18 = arith.constant 0 : index
      %c0_19 = arith.constant 0 : index
      %32 = vector.load %arg9[%c0_18, %c0_19] : memref<8x128xf32, #tpu.memory_space<vmem>>, vector<8x128xf32>
      %33 = vector.extract_strided_slice %32 {offsets = [0, 0], sizes = [8, 1], strides = [1, 1]} : vector<8x128xf32> to vector<8x1xf32>
      %c0_20 = arith.constant 0 : index
      %c0_21 = arith.constant 0 : index
      %34 = vector.load %arg10[%c0_20, %c0_21] : memref<8x128xf32, #tpu.memory_space<vmem>>, vector<8x128xf32>
      %35 = vector.extract_strided_slice %34 {offsets = [0, 0], sizes = [8, 1], strides = [1, 1]} : vector<8x128xf32> to vector<8x1xf32>
      %c0_22 = arith.constant 0 : index
      %c0_23 = arith.constant 0 : index
      %36 = vector.load %arg4[%c0_22, %c0_23] : memref<8x1xf32, #tpu.memory_space<vmem>>, vector<8x1xf32>
      %37 = arith.divf %35, %36 : vector<8x1xf32>
      %38 = arith.subf %37, %31 : vector<8x1xf32>
      %39 = math.log %33 : vector<8x1xf32>
      %40 = arith.subf %38, %39 : vector<8x1xf32>
      %41 = tpu.iota {dimensions = array<i32: 0>} : vector<8x1xi32>
      %42 = vector.broadcast %0 : i32 to vector<8x1xi32>
      %43 = arith.addi %42, %41 : vector<8x1xi32>
      %c16_i32 = arith.constant 16 : i32
      %44 = vector.broadcast %c16_i32 : i32 to vector<8x1xi32>
      %45 = arith.cmpi slt, %43, %44 : vector<8x1xi32>
      %cst_24 = arith.constant -1.000000e+00 : f32
      %46 = vector.broadcast %cst_24 : f32 to vector<8x1xf32>
      %47 = arith.mulf %46, %40 : vector<8x1xf32>
      %cst_25 = arith.constant 0.000000e+00 : f32
      %48 = vector.broadcast %cst_25 : f32 to vector<8x1xf32>
      %49 = arith.select %45, %47, %48 : vector<8x1xi1>, vector<8x1xf32>
      %c0_26 = arith.constant 0 : index
      %c0_27 = arith.constant 0 : index
      %50 = vector.load %arg7[%c0_26, %c0_27] : memref<8x1xf32, #tpu.memory_space<vmem>>, vector<8x1xf32>
      tpu.vector_store %arg7[%c0_26, %c0_27], %49 {strides = array<i32>} : memref<8x1xf32, #tpu.memory_space<vmem>>, vector<8x1xf32>,
    } else {
    }
    return
  }
  func.func @transform_0(%arg0: i32, %arg1: i32) -> (i32, i32) {
    %c0_i32 = arith.constant 0 : i32
    %c0_i32_0 = arith.constant 0 : i32
    return %arg0, %c0_i32 : i32, i32
  }
  func.func @transform_1(%arg0: i32, %arg1: i32) -> (i32, i32) {
    %c0_i32 = arith.constant 0 : i32
    %c0_i32_0 = arith.constant 0 : i32
    return %c0_i32, %arg1 : i32, i32
  }
  func.func @transform_2(%arg0: i32, %arg1: i32) -> (i32, i32) {
    %c0_i32 = arith.constant 0 : i32
    %c0_i32_0 = arith.constant 0 : i32
    return %arg0, %c0_i32 : i32, i32
  }
  func.func @transform_3(%arg0: i32, %arg1: i32) -> (i32, i32) {
    %c0_i32 = arith.constant 0 : i32
    %c0_i32_0 = arith.constant 0 : i32
    return %arg0, %c0_i32 : i32, i32
  }
  func.func @transform_4(%arg0: i32, %arg1: i32) -> (i32, i32) {
    %c0_i32 = arith.constant 0 : i32
    %c0_i32_0 = arith.constant 0 : i32
    return %c0_i32, %arg1 : i32, i32
  }
  func.func @transform_5(%arg0: i32, %arg1: i32) -> (i32, i32) {
    %c0_i32 = arith.constant 0 : i32
    %c0_i32_0 = arith.constant 0 : i32
    return %arg0, %c0_i32 : i32, i32
  }
}

</mosaic_0001>

<bundles_post_ra>
// kernel: tpu_custom_call.1
= control target key start
LH: loop header
LB: loop body
LE: loop exit
PB: predicated region body
PF: predicated region fallthrough
CT: control target
= control target key end

     0   :  { %10 = vsyncpa [#allocation6], 0  ;;  %s1089_s0 = inlined_call_operand.vmem [shape: s32[16,1], index: 0, kind: input, shape index: {}]   ;;  %s1090_s1 = inlined_call_operand.vmem [shape: s32[1,128], index: 1, kind: input, shape index: {}]   ;;  %s1091_s2 = inlined_call_operand.vmem [shape: f32[16,1], index: 2, kind: input, shape index: {}]   ;;  %s1092_s3 = inlined_call_operand.hbm [shape: f32[16,32], index: 3, kind: input, shape index: {}]   ;;  %s1093_s4 = inlined_call_operand.vmem [shape: f32[32,128], index: 4, kind: input, shape index: {}]   ;;  %s1094_s5 = inlined_call_operand.vmem [shape: f32[16,1], index: 5, kind: output, shape index: {}]  }
   0x1   :  { %12 = vsyncpa [#allocation6 + $0x1], 0  ;;  %s960_s18 = smov 0   ;;  %s962_s19 = smov 0  }
   0x2   :  { %s964_s20 = smov 0   ;;  %s966_s21 = smov 0  }
   0x3   :  { %s968_s22 = smov 0   ;;  %s970_s23 = smov 0  }
   0x4 LB: > { %s764_s24 = sadd.s32 4294967295, %s927_s23   ;;  %s30_s25 = sadd.s32 1, %s923_s22  ;;  %s927_s23 = sphi %s970_s23, %s18_s23   ;;  %s923_s22 = sphi %s968_s22, %s1103_s22   ;;  %s919_s21 = sphi %s966_s21, %s1102_s21   ;;  %s915_s20 = sphi %s964_s20, %s1101_s20   ;;  %s911_s19 = sphi %s962_s19, %s1100_s19   ;;  %s907_s18 = sphi %s960_s18, %s1099_s18  }
   0x5   : > { %p32_p0 = scmp.ge.s32.totalorder %s30_s25, 2  ;;  %s115_s26 = sadd.s32 1, %s915_s20 }
   0x6   : > { %p122_p1 = scmp.ne.s32.totalorder %s915_s20, %s911_s19  ;;  %p123_p2 = scmp.eq.s32.totalorder %s927_s23, 0 }
   0x7   : > { %s1105_s25 = smov (%p32_p0, %s30_s25), 0  ;;  %p128_p4 = scmp.ne.s32.totalorder %s911_s19, %s907_s18 }
   0x8   : > { %p996_p3 = por %p123_p2, %p122_p1  ;;  %s112_s28 = ssub.s32 %s923_s22, %s1105_s25 }
   0x9   : > { %p129_p5 = scmp.eq.s32.totalorder %s764_s24, 0  ;;  %p113_p6 = scmp.eq.s32.totalorder %s112_s28, 0 }
   0xa   : > { %p787_p8 = scmp.lt.s32.totalorder %s927_s23, 2  ;;  %s231_s6 = sand.u32 1, %s915_s20  }
   0xb   : > { %p1003_p7 = por %p129_p5, %p128_p4  ;;  %s771_s7 = sshll.u32 %s923_s22, 3 }
   0xc   : > { %s1009_s30 = scalar_select %p113_p6, %s915_s20, %s115_s26  }
   0xd   : > { %s770_s8 = sshll.u32 %s231_s6, 3  ;;  %s239_s11 = scalar_lea.hbm %s1092_s3, %s771_s7 }
   0xe   : > { %s241_s12 = sshll.u32 %s239_s11, 4  ;;  %s235_s13 = scalar_lea.vmem [#allocation5], %s770_s8  ;;  %s242_s12 = int_to_ptr.hbm [resolvable:$true] %s241_s12 }
   0xf   : > { %s243_s14 = sshll.u32 %s235_s13, 4  ;;  %p784_p9 = pnand %p787_p8, %p996_p3  ;;  %s244_s14 = int_to_ptr.vmem [resolvable:$true] %s243_s14 }
  0x10   : > { %p772_p10 = scmp.ge.s32.totalorder %s927_s23, 1  ;;  %p248_p11 = scmp.lt.s32.totalorder %s927_s23, 3 }
  0x11   : > { %s232_s15 = scalar_lea.sflag [#allocation6], %s231_s6 }
  0x12   : > { %786 = dma.hbm_to_vmem [thread:$0]  (!%p784_p9), %s242_s12, 128, %s244_s14, %s232_s15  }
  0x13   : > { %p249_p12 = pnand %p772_p10, %p248_p11 }
  0x14   : > { %s254_s16 = sand.u32 (!%p249_p12), 1, %s911_s19  }
  0x15   : > { %252 = sbr.rel (%p249_p12) target bundleno = 448 (0x1c0), region = 40  ;;  %s773_s17 = sshll.u32 (!%p249_p12), %s254_s16, 3 }
  0x16   : > { %s255_s18 = scalar_lea.sflag (!%p249_p12), [#allocation6], %s254_s16  ;;  %s258_s24 = scalar_lea.vmem (!%p249_p12), [#allocation5], %s773_s17 }
  0x1a   : > { %902 = dma.done.wait (%p1003_p7), %s255_s18, 128  }
  0x1b   : > { %904 = vsyncadd (%p1003_p7), %s255_s18, 4294967168  ;;  %vm333_vm0 = vcmask 261120   ;;  %v332_v0 = vld [vmem:[%s1093_s4 + $0x18] sm:$0xff]  ;;  %v331_v1 = vld [vmem:[%s1093_s4 + $0x10] sm:$0xff]  ;;  %s777_s29 = sshll.u32 %s919_s21, 3  ;;  %v540_v31 = vlaneseq  ;;  %v929_v37 = vmov 0  }
  0x1c   : > { %v330_v2 = vld [vmem:[%s1093_s4 + $0x8] sm:$0xff]  ;;  %v349_v3 = vand.u32 4294901760, %v332_v0  ;;  %v351_v4 = vand.u32 4294901760, %v331_v1  ;;  %v329_v6 = vld [vmem:[%s1093_s4] sm:$0xff]  ;;  %v542_v33 = vstv %s777_s29  ;;  %837 = vset.pattern.permute.xlu0 %v929_v37  ;;  %p300_p13 = scmp.lt.s32.totalorder %s919_s21, 1  ;;  %vm638_vm11 = vcmask 7168  }
  0x1d   : > { %v353_v5 = vand.u32 4294901760, %v330_v2  ;;  %v328_v7 = vld [vmem:[%s258_s24] sm:$0xff]  ;;  %v355_v8 = vand.u32 4294901760, %v329_v6  ;;  %v541_v32 = vshrl.u32 %v540_v31, 7  ;;  %v545_v35 = vand.u32 127, %v540_v31 }
  0x1e   : > { %v335_v9 = vsel %vm333_vm0, %v328_v7, 0  ;;  %v379_v10 = vsub.f32 %v332_v0, %v349_v3  ;;  %350 = vmatpush.msra.mxu0 %v349_v3  ;;  %v385_v11 = vsub.f32 %v331_v1, %v351_v4  ;;  %450 = vmatpush.msra.mxu3 %v349_v3  ;;  %s1107_s21 = smov (!%p300_p13, %s919_s21), 1  ;;  %v838_v58 = vld [vmem:[%s1090_s1] ss:$0 sm:$0xff] }
  0x1f   : > { %v391_v12 = vsub.f32 %v330_v2, %v353_v5  ;;  %v357_v13 = vand.u32 4294901760, %v335_v9  ;;  %v397_v14 = vsub.f32 %v329_v6, %v355_v8  ;;  %v1038_v34 = vadd.s32 %v542_v33, %v541_v32  ;;  %s1049_s11 = sshll.u32 %s1107_s21, 3 }
  0x20   : > { %421 = vmatpush.msra.mxu2 %v379_v10  ;;  %352 = vmatpush.msra.mxu0 %v351_v4  ;;  %v380_v15 = vand.u32 4294901760, %v379_v10  ;;  %v386_v16 = vand.u32 4294901760, %v385_v11  ;;  %vm549_vm2 = vcmp.lt.s32.totalorder %v545_v35, 16  ;;  %s303_s14 = scalar_lea.vmem %s1089_s0, %s1049_s11  ;;  %s310_s18 = scalar_lea.vmem %s1091_s2, %s1049_s11 }
  0x21   : > { %v358_v17 = vsub.f32 %v335_v9, %v357_v13  ;;  %v392_v18 = vand.u32 4294901760, %v391_v12  ;;  %452 = vmatpush.msra.mxu3 %v351_v4  ;;  %v398_v19 = vand.u32 4294901760, %v397_v14  ;;  %vm548_vm1 = vcmp.ne.s32.totalorder %v1038_v34, %v545_v35  ;;  %v523_v51 = vld [vmem:[%s303_s14] sm:$0xff]  ;;  %s318_s27 = scalar_lea.vmem %s1094_s5, %s1049_s11 }
  0x22   : > { %424 = vmatpush.msra.mxu2 %v385_v11  ;;  %v381_v20 = vsub.f32 %v379_v10, %v380_v15  ;;  %354 = vmatpush.msra.mxu0 %v353_v5  ;;  %v387_v21 = vsub.f32 %v385_v11, %v386_v16  ;;  %vm1042_vm3 = vmand %vm549_vm2, %vm548_vm1  ;;  %v611_v61 = vld [vmem:[%s310_s18] sm:$0xff]  ;;  %vm635_vm10 = vcmp.lt.s32.totalorder %v1038_v34, 16 }
  0x23   : > { %v393_v22 = vsub.f32 %v391_v12, %v392_v18  ;;  %v359_v23 = vand.u32 4294901760, %v358_v17  ;;  %454 = vmatpush.msra.mxu3 %v353_v5  ;;  %v399_v27 = vsub.f32 %v397_v14, %v398_v19  ;;  %vm617_vm6 = vweird.f32 %v611_v61 }
  0x24   : > { %v382_v24 = vand.u32 4294901760, %v381_v20  ;;  %427 = vmatpush.msra.mxu2 %v391_v12  ;;  %v388_v25 = vand.u32 4294901760, %v387_v21  ;;  %356 = vmatpush.msra.mxu0 %v355_v8  ;;  %v623_v6 = vand.u32 2147483648, %v611_v61  ;;  %v621_v9 = vand.u32 2147483647, %v611_v61 }
  0x25   : > { %v360_v26 = vsub.f32 %v358_v17, %v359_v23  ;;  %456 = vmatpush.msra.mxu3 %v355_v8  ;;  %v394_v28 = vand.u32 4294901760, %v393_v22  ;;  %v400_v30 = vand.u32 4294901760, %v399_v27 }
  0x26   : > { %479 = vmatpush.msrb.mxu0 %v380_v15  ;;  %383 = vmatpush.msra.mxu1 %v382_v24  ;;  %v624_v11 = vor.u32 1.1754944e-38, %v623_v6  ;;  %vm622_vm9 = vcmp.eq.f32.partialorder %v621_v9, 8.507059e+37 }
  0x27   : > { %430 = vmatpush.msra.mxu2 %v397_v14  ;;  %v361_v29 = vand.u32 4294901760, %v360_v26  ;;  %460 = vmatmul.f32.vlgmr.msra.gmra.mxu3 %v359_v23 }
  0x28   : > { %433 = vmatmul.f32.vlgmr.msra.gmra.mxu2 %v358_v17  ;;  %389 = vmatpush.msra.mxu1 %v388_v25 }
  0x29   : > { %362 = vmatmul.f32.vlgmr.msra.gmra.mxu0 %v361_v29 }
  0x2a   : > { %483 = vmatpush.msrb.mxu0 %v386_v16  ;;  %395 = vmatpush.msra.mxu1 %v394_v28 }
  0x2c   : > { %487 = vmatpush.msrb.mxu0 %v392_v18  ;;  %401 = vmatpush.msra.mxu1 %v400_v30 }
  0x2d   : > { %403 = vmatmul.f32.vlgmr.msra.gmra.mxu1 %v357_v13 }
  0x2e   : > { %491 = vmatpush.msrb.mxu0 %v398_v19  ;;  %510 = vmatpush.msrb.mxu1 %v349_v3 }
  0x30   : > { %512 = vmatpush.msrb.mxu1 %v351_v4 }
  0x31   : > { %493 = vmatmul.f32.vlgmr.msrb.gmra.mxu0 %v357_v13 }
  0x32   : > { %514 = vmatpush.msrb.mxu1 %v353_v5 }
  0x34   : > { %516 = vmatpush.msrb.mxu1 %v355_v8 }
  0x35   : > { %518 = vmatmul.f32.vlgmr.msrb.gmra.mxu1 %v357_v13 }
  0xa6   : > { %v363_v38 = vpop.f32.mrf.mxu0 }
  0xaa   : > { %v404_v39 = vpop.f32.mrf.mxu1  ;;  %v461_v42 = vpop.f32.mrf.mxu3 }
  0xab   : > { %v434_v40 = vpop.f32.mrf.mxu2  ;;  %v405_v41 = vadd.f32 %v404_v39, %v363_v38 }
  0xad   : > { %v435_v43 = vadd.f32 %v434_v40, %v405_v41 }
  0xae   : > { %v494_v44 = vpop.f32.mrf.mxu0 }
  0xaf   : > { %v462_v45 = vadd.f32 %v461_v42, %v435_v43 }
  0xb1   : > { %v495_v46 = vadd.f32 %v494_v44, %v462_v45 }
  0xb2   : > { %v519_v47 = vpop.f32.mrf.mxu1 }
  0xb3   : > { %v520_v48 = vadd.f32 %v519_v47, %v495_v46 }
  0xb5   : > { %v522_v49 = vmul.f32 14.285714, %v520_v48 }
  0xb7   : > { %v553_v50 = vsel %vm549_vm2, %v522_v49, -1e+30  ;;  %v554_v54 = vsel %vm1042_vm3, %v522_v49, -1e+30 }
  0xb8   : > { %557 = vmax.xlane.f32.xlu0 %v553_v50 }
  0xcc   : > { %526 = vperm.xlu0 %837, %v523_v51  }
 0x12b   : > { %v558_v52 = vpop.xlane.xlu0 %557 }
 0x12c   : > { %v559_v53 = vmax.f32 %v558_v52, -1e+30 }
 0x12e   : > { %v560_v55 = vsub.f32 %v554_v54, %v559_v53  ;;  %v563_v62 = vsub.f32 -1e+30, %v559_v53 }
 0x130   : > { %v561_v56 = vmul.f32 1.442695, %v560_v55  ;;  %v564_v0 = vmul.f32 1.442695, %v563_v62 }
 0x132   : > { %839 = vpow2.f32 %v561_v56 }
 0x133   : > { %841 = vrcp.f32 %v611_v61 }
 0x134   : > { %843 = vpow2.f32 %v564_v0 }
 0x138   : > { %v840_v57 = vpop.eup %839 }
 0x139   : > { %568 = vadd.xlane.f32.xlu1 %v840_v57  ;;  %v842_v63 = vpop.eup %841 }
 0x13a   : > { %v613_v1 = vmul.f32 %v842_v63, %v611_v61  ;;  %v844_v3 = vpop.eup %843  ;;  %vm618_vm7 = vweird.f32 %v842_v63 }
 0x13b   : > { %v567_v5 = vmul.f32 0.0, %v844_v3  ;;  %vm619_vm8 = vmor %vm617_vm6, %vm618_vm7 }
 0x13c   : > { %v614_v2 = vsub.f32 1.0, %v613_v1 }
 0x13e   : > { %v527_v59 = vpop.permute.xlu0 %526  ;;  %v615_v4 = vmul.f32 %v842_v63, %v614_v2 }
 0x13f   : > { %vm529_vm4 = vcmp.eq.s32.totalorder %v527_v59, %v838_v58 }
 0x140   : > { %vm555_vm5 = vmand %vm529_vm4, %vm1042_vm3  ;;  %v616_v8 = vadd.f32 %v842_v63, %v615_v4 }
 0x141   : > { %v573_v60 = vsel %vm555_vm5, %v522_v49, 0.0 }
 0x142   : > { %574 = vadd.xlane.f32.xlu1 %v573_v60  ;;  %v620_v12 = vsel %vm619_vm8, %v842_v63, %v616_v8 }
 0x143   : > { %v625_v13 = vsel %vm622_vm9, %v624_v11, %v620_v12 }
 0x1ac   : > { %v569_v7 = vpop.xlane.xlu1 %568 }
 0x1ad   : > { %v570_v10 = vadd.f32 %v569_v7, %v567_v5 }
 0x1af   : > { %845 = vlog2.f32 %v570_v10 }
 0x1b5   : > { %v846_v14 = vpop.eup %845  ;;  %v575_v15 = vpop.xlane.xlu1 %574 }
 0x1b6   : > { %v626_v16 = vmul.f32 %v625_v13, %v575_v15  ;;  %v629_v17 = vmul.f32 0.6931472, %v846_v14 }
 0x1b8   : > { %v627_v18 = vsub.f32 %v626_v16, %v559_v53 }
 0x1ba   : > { %v630_v19 = vsub.f32 %v627_v18, %v629_v17 }
 0x1bc   : > { %v636_v20 = vmul.f32 -1.0, %v630_v19 }
 0x1be   : > { %v637_v21 = vsel %vm635_vm10, %v636_v20, 0.0 }
 0x1bf   : > { %639 = vst.msk [vmem:[%s318_s27] sm:$0xff] %vm638_vm11, %v637_v21 }
 0x1c0 PF: > { %s18_s23 = sadd.s32 1, %s927_s23   ;;  %s1099_s18 = smov %s911_s19 }
 0x1c1   : > { %p15_p0 = scmp.ge.s32.totalorder %s18_s23, 4   ;;  %s1100_s19 = smov %s915_s20 }
 0x1c2   : > { %s1101_s20 = smov %s1009_s30  ;;  %s1102_s21 = smov %s923_s22 }
 0x1c3   : > { %s1103_s22 = smov %s1105_s25  ;;  %17 = sbr.rel (!%p15_p0) target bundleno = 4 (0x4), region = 108 }
 0x1c8   :  { %659 = vsyncpa [#allocation6], 1 }
 0x1c9   :  { %661 = vsyncpa [#allocation6 + $0x1], 1 }

</bundles_post_ra>
